<compile_context>
chip_gen: v5e
topology: v5e:2x2
jax: 0.10.0
libtpu: 0.0.40
codegen_flags: <defaults>
</compile_context>

<pallas_src>
import functools

import jax
import jax.numpy as jnp
from jax.experimental import pallas as pl
from jax.experimental.pallas import tpu as pltpu


# ----------------------------- Pallas kernel ------------------------------- #
def _resblock_kernel(x_ref, wbig_ref, w2_ref, shifts_ref, out_ref, *,
                     C_in, C_out, K, TL, TLh, pad, L, has_res_path, mxu_dtype):
    # x_ref     : (1, 1, C_in, TL + 4*pad)   haloed input slab for this tile,
    #             x_ref[0,0,c,i] = x_pad2[c, t*TL + i]   (x_pad2 = x padded 2*pad)
    # wbig_ref  : (C_out, K*C_in [+ C_in])   conv1 taps (bn1 scale folded) and,
    #             for the projection-residual case, the 1x1 residual weights
    #             (bnr scale folded) appended as the last C_in columns.
    # w2_ref    : (C_out, K*C_out)           conv2 taps (bn2 scale folded)
    # shifts_ref: (C_out, 3)                 packed BN shifts [t1, t2, tr]
    # out_ref   : (1, C_out, TL)
    t = pl.program_id(1)
    f32 = jnp.float32

    S = x_ref[0, 0]                                   # (C_in, TL + 4*pad), x.dtype
    Sm = S.astype(mxu_dtype)                          # MXU operand copy (in-register)
    t1 = shifts_ref[:, 0:1]
    t2 = shifts_ref[:, 1:2]

    # ---- conv1: K accumulated MXU dots over static lane-shifted taps -------
    z = None
    for k in range(K):
        zk = jnp.dot(wbig_ref[:, k * C_in:(k + 1) * C_in], Sm[:, k:k + TLh],
                     preferred_element_type=f32)
        z = zk if z is None else z + zk
    h = jnp.maximum(z + t1, 0.0)                      # (C_out, TLh), f32

    # Halo columns of h outside the true sequence must be exactly zero before
    # conv2 (they are h's zero padding, not conv1-of-x's-extra-padding).  Only
    # the first tile's leading `pad` and the last tile's trailing `pad` columns
    # are ever affected; interior tiles see an all-true mask (cheap VPU filler
    # hidden under the MXU — correct alternatives touch the same C_out*TLh
    # elements or force h through a VMEM scratch round trip).
    j = jax.lax.broadcasted_iota(jnp.int32, (1, TLh), 1)
    m = t * TL + j
    h = jnp.where((m >= pad) & (m < pad + L), h, 0.0)

    # ---- conv2: K accumulated MXU dots over lane-shifted slices of h -------
    hc = h.astype(mxu_dtype)
    y = None
    for k in range(K):
        yk = jnp.dot(w2_ref[:, k * C_out:(k + 1) * C_out], hc[:, k:k + TL],
                     preferred_element_type=f32)
        y = yk if y is None else y + yk
    y = y + t2

    # ---- residual path ------------------------------------------------------
    if has_res_path:
        tr = shifts_ref[:, 2:3]
        res = jnp.dot(wbig_ref[:, K * C_in:], Sm[:, 2 * pad:2 * pad + TL],
                      preferred_element_type=f32) + tr
    else:
        # Identity skip: read straight from the input slab in its ORIGINAL
        # dtype (not the bf16 MXU copy) so the skip-add keeps full precision.
        res = S[:, 2 * pad:2 * pad + TL].astype(f32)

    out_ref[0] = jnp.maximum(y + res, 0.0).astype(out_ref.dtype)


# --------------------------- VMEM-aware tiling ------------------------------ #
def _vmem_capacity_bytes():
    try:
        return int(pltpu.get_tpu_info().vmem_capacity_bytes)
    except Exception:
        return 64 << 20          # conservative: v7x has the smallest VMEM/core


def _rup(n, m):
    return -(-n // m) * m


def _vmem_estimate(TL, C_in, C_out, K, pad, wcols, in_isz, w_isz, out_isz):
    """Rough per-step VMEM footprint (padded to (8,128) tiles), in bytes."""
    TLh, TLh2 = TL + 2 * pad, TL + 4 * pad
    cin, cout = _rup(C_in, 8), _rup(C_out, 8)
    x_blk = 2 * cin * _rup(TLh2, 128) * in_isz                  # double-buffered slab
    o_blk = 2 * cout * _rup(TL, 128) * out_isz                  # double-buffered out
    w_res = cout * (_rup(wcols, 128) + _rup(K * C_out, 128)) * w_isz  # Buffered(1)
    w_res += cout * 128 * 4                                     # packed shifts
    inter = 4 * (3 * cout * _rup(TLh, 128)                      # z, h, dot partials
                 + 3 * cout * _rup(TL, 128)                     # y, res, out staging
                 + cin * _rup(TLh2, 128))                       # MXU operand copy
    return x_blk + o_blk + w_res + inter


def _pick_l_tile(L, C_in, C_out, K, pad, wcols, in_isz, w_isz, out_isz, cap):
    """Largest lane-dense (multiple-of-128) tile dividing L that fits VMEM."""
    budget = int(cap * 0.60)
    cands = [d for d in range(4096, 127, -128) if d <= L and L % d == 0]
    if not cands:
        return L                  # small / irregular L: one full-extent tile
    for tl in cands:
        if _vmem_estimate(tl, C_in, C_out, K, pad, wcols,
                          in_isz, w_isz, out_isz) <= budget:
            return tl
    return cands[-1]


# ------------------------------ wrapper ------------------------------------ #
def res_block_forward(x, params, *, kernel_size=3, padding=1, stride=1,
                      use_bf16_mxu=True):
    """Eval-mode ResBlock forward. x: (N, C_in, L) -> (N, C_out, L)."""
    assert stride == 1, "stride != 1 not supported"
    assert padding == (kernel_size - 1) // 2, "only 'same' padding supported"
    N, C_in, L = x.shape
    K, pad = kernel_size, padding
    C_out = params["w1"].shape[0]
    has_res_path = params.get("wr") is not None
    eps = 1e-5
    f32 = jnp.float32
    mxu_dtype = jnp.bfloat16 if use_bf16_mxu else f32

    # Fold BN (eval mode) + conv bias: bn(conv(x)+b) = s*conv(x) + (s*(b-m)+beta)
    def fold(gamma, beta, mean, var, bias):
        s = (gamma / jnp.sqrt(var + eps)).astype(f32)
        t = (s * (bias - mean) + beta).astype(f32)
        return s, t

    s1, t1 = fold(params["bn1_g"], params["bn1_b"], params["bn1_m"],
                  params["bn1_v"], params["b1"])
    s2, t2 = fold(params["bn2_g"], params["bn2_b"], params["bn2_m"],
                  params["bn2_v"], params["b2"])

    # BN scales folded into the conv weights (in f32, before any bf16 cast);
    # column layout k*C_in + c matches the in-kernel tap order.
    W1f = (s1[:, None, None]
           * jnp.transpose(params["w1"], (0, 2, 1)).astype(f32)).reshape(C_out, K * C_in)
    W2f = (s2[:, None, None]
           * jnp.transpose(params["w2"], (0, 2, 1)).astype(f32)).reshape(C_out, K * C_out)
    if has_res_path:
        sr, tr = fold(params["bnr_g"], params["bnr_b"], params["bnr_m"],
                      params["bnr_v"], params["br"])
        Wbig = jnp.concatenate(
            [W1f, sr[:, None] * params["wr"][:, :, 0].astype(f32)], axis=1)
    else:
        tr = jnp.zeros((C_out,), f32)             # unused in identity path
        Wbig = W1f
    wcols = Wbig.shape[1]
    shifts = jnp.stack([t1, t2, tr], axis=1)      # (C_out, 3): one DMA, not three

    Wbig = Wbig.astype(mxu_dtype)
    W2f = W2f.astype(mxu_dtype)

    # ---- VMEM-aware L tile --------------------------------------------------
    in_isz = jnp.dtype(x.dtype).itemsize
    w_isz = jnp.dtype(mxu_dtype).itemsize
    out_isz = in_isz
    cap = _vmem_capacity_bytes()
    TL = _pick_l_tile(L, C_in, C_out, K, pad, wcols, in_isz, w_isz, out_isz, cap)
    T = L // TL
    TLh, TLh2 = TL + 2 * pad, TL + 4 * pad

    # ---- per-tile haloed slab (NO K-tap replication) ------------------------
    # Xs[n, t, c, i] = x_pad2[n, c, t*TL + i],  x_pad2 = x zero-padded by 2*pad.
    x_pad2 = jnp.pad(x, ((0, 0), (0, 0), (2 * pad, 2 * pad)))
    if T == 1:
        Xs = x_pad2[:, None]                                   # (N, 1, C_in, TLh2)
    else:
        cols = jnp.arange(T)[:, None] * TL + jnp.arange(TLh2)[None, :]
        Xs = jnp.transpose(x_pad2[:, :, cols], (0, 2, 1, 3))   # (N, T, C_in, TLh2)

    kernel = functools.partial(
        _resblock_kernel, C_in=C_in, C_out=C_out, K=K, TL=TL, TLh=TLh, pad=pad,
        L=L, has_res_path=has_res_path, mxu_dtype=mxu_dtype)

    # ---- cost estimate + VMEM budget ----------------------------------------
    est = _vmem_estimate(TL, C_in, C_out, K, pad, wcols, in_isz, w_isz, out_isz)
    vmem_limit = int(min(cap * 0.78, max(2 * est, 24 << 20)))

    flops = 2 * N * T * (C_out * K * C_in * TLh + C_out * K * C_out * TL)
    if has_res_path:
        flops += 2 * N * T * C_out * C_in * TL
    bytes_accessed = (Xs.size * in_isz + Wbig.size * w_isz + W2f.size * w_isz
                      + shifts.size * 4 + N * C_out * L * out_isz)
    cost = pl.CostEstimate(flops=int(flops), transcendentals=0,
                           bytes_accessed=int(bytes_accessed))

    # Weights / shifts are grid-invariant: single-buffer them (halves their
    # VMEM residency vs. the default double-buffering — matters on v7x).
    def const_spec(shape):
        return pl.BlockSpec(shape, lambda n, t: (0,) * len(shape),
                            pipeline_mode=pl.Buffered(1))

    return pl.pallas_call(
        kernel,
        out_shape=jax.ShapeDtypeStruct((N, C_out, L), x.dtype),
        grid=(N, T),
        in_specs=[
            pl.BlockSpec((1, 1, C_in, TLh2), lambda n, t: (n, t, 0, 0)),  # x slab
            const_spec((C_out, wcols)),          # conv1 (+ fused residual) weights
            const_spec((C_out, K * C_out)),      # conv2 weights
            const_spec((C_out, 3)),              # packed BN shifts
        ],
        out_specs=pl.BlockSpec((1, C_out, TL), lambda n, t: (n, 0, t)),
        compiler_params=pltpu.CompilerParams(
            dimension_semantics=("parallel", "parallel"),
            vmem_limit_bytes=vmem_limit),
        cost_estimate=cost,
    )(Xs, Wbig, W2f, shifts)


# ------------------------- deterministic init ------------------------------ #
def init_params(key, num_ins, num_outs, kernel_size=3):
    ks = jax.random.split(key, 16)
    f32 = jnp.float32
    p = {
        "w1": 0.1 * jax.random.normal(ks[0], (num_outs, num_ins, kernel_size), f32),
        "b1": 0.1 * jax.random.normal(ks[1], (num_outs,), f32),
        "bn1_g": 1.0 + 0.1 * jax.random.normal(ks[2], (num_outs,), f32),
        "bn1_b": 0.1 * jax.random.normal(ks[3], (num_outs,), f32),
        "bn1_m": 0.1 * jax.random.normal(ks[4], (num_outs,), f32),
        "bn1_v": 1.0 + 0.1 * jnp.abs(jax.random.normal(ks[5], (num_outs,), f32)),
        "w2": 0.1 * jax.random.normal(ks[6], (num_outs, num_outs, kernel_size), f32),
        "b2": 0.1 * jax.random.normal(ks[7], (num_outs,), f32),
        "bn2_g": 1.0 + 0.1 * jax.random.normal(ks[8], (num_outs,), f32),
        "bn2_b": 0.1 * jax.random.normal(ks[9], (num_outs,), f32),
        "bn2_m": 0.1 * jax.random.normal(ks[10], (num_outs,), f32),
        "bn2_v": 1.0 + 0.1 * jnp.abs(jax.random.normal(ks[11], (num_outs,), f32)),
    }
    if num_ins != num_outs:
        p.update({
            "wr": 0.1 * jax.random.normal(ks[12], (num_outs, num_ins, 1), f32),
            "br": 0.1 * jax.random.normal(ks[13], (num_outs,), f32),
            "bnr_g": 1.0 + 0.1 * jax.random.normal(ks[14], (num_outs,), f32),
            "bnr_b": 0.1 * jax.random.normal(ks[15], (num_outs,), f32),
            "bnr_m": jnp.zeros((num_outs,), f32),
            "bnr_v": jnp.ones((num_outs,), f32),
        })
    else:
        p["wr"] = None
    return p


# ---------------------------- pure-JAX reference ---------------------------- #
def _conv1d_ref(x, w, b, padding):
    xp = jnp.pad(x, ((0, 0), (0, 0), (padding, padding)))
    K = w.shape[2]
    Lo = x.shape[2] + 2 * padding - K + 1
    out = jnp.zeros((x.shape[0], w.shape[0], Lo), jnp.float32)
    for k in range(K):
        out = out + jnp.einsum("oc,ncl->nol", w[:, :, k], xp[:, :, k:k + Lo],
                               precision=jax.lax.Precision.HIGHEST)
    return out + b[None, :, None]


def _bn_ref(x, g, b, m, v, eps=1e-5):
    return (g[None, :, None] * (x - m[None, :, None])
            / jnp.sqrt(v[None, :, None] + eps) + b[None, :, None])


def res_block_ref(x, p):
    h = jax.nn.relu(_bn_ref(_conv1d_ref(x, p["w1"], p["b1"], 1),
                            p["bn1_g"], p["bn1_b"], p["bn1_m"], p["bn1_v"]))
    y = _bn_ref(_conv1d_ref(h, p["w2"], p["b2"], 1),
                p["bn2_g"], p["bn2_b"], p["bn2_m"], p["bn2_v"])
    if p.get("wr") is not None:
        res = _bn_ref(_conv1d_ref(x, p["wr"], p["br"], 0),
                      p["bnr_g"], p["bnr_b"], p["bnr_m"], p["bnr_v"])
    else:
        res = x
    return jax.nn.relu(y + res)


# ---------------------------------- main ------------------------------------ #
if __name__ == "__main__":
    key = jax.random.PRNGKey(0)
    k1, k2, k3, k4, k5, k6 = jax.random.split(key, 6)

    # Case 1: projection residual (num_ins != num_outs), tiny L, f32 MXU.
    N, C_in, C_out, L = 2, 4, 8, 16
    p1 = init_params(k1, C_in, C_out, kernel_size=3)
    x1 = jax.random.normal(k2, (N, C_in, L), jnp.float32)
    o1 = jax.block_until_ready(res_block_forward(x1, p1, use_bf16_mxu=False))
    r1 = res_block_ref(x1, p1)
    assert o1.shape == (N, C_out, L)
    assert jnp.allclose(o1, r1, atol=1e-3, rtol=1e-3), "mismatch (projection residual)"

    # Case 2: identity residual, long L (multi-tile: interior + boundary masking).
    N2, C2, L2 = 2, 8, 12288
    p2 = init_params(k3, C2, C2, kernel_size=3)
    x2 = jax.random.normal(k4, (N2, C2, L2), jnp.float32)
    o2 = jax.block_until_ready(res_block_forward(x2, p2, use_bf16_mxu=False))
    r2 = res_block_ref(x2, p2)
    assert o2.shape == (N2, C2, L2)
    assert jnp.allclose(o2, r2, atol=1e-3, rtol=1e-3), "mismatch (identity residual)"

    # Case 3: default bf16 MXU operands (v6e/v7x rate), f32 accumulation/elementwise.
    N3, C3i, C3o, L3 = 2, 16, 32, 512
    p3 = init_params(k5, C3i, C3o, kernel_size=3)
    x3 = jax.random.normal(k6, (N3, C3i, L3), jnp.float32)
    o3 = jax.block_until_ready(res_block_forward(x3, p3))   # use_bf16_mxu=True default
    r3 = res_block_ref(x3, p3)
    assert o3.shape == (N3, C3o, L3)
    assert jnp.allclose(o3, r3, atol=3e-2, rtol=3e-2), "mismatch (bf16 MXU)"

    print("KERNEL_OK")
</pallas_src>

<mosaic_0001>
module attributes {stable_mosaic.version = 11 : i64} {
  func.func @_resblock_kernel(%arg0: i32, %arg1: i32, %arg2: memref<1x1x4x20xf32, #tpu.memory_space<vmem>>, %arg3: memref<8x16xf32, #tpu.memory_space<vmem>>, %arg4: memref<8x24xf32, #tpu.memory_space<vmem>>, %arg5: memref<8x3xf32, #tpu.memory_space<vmem>>, %arg6: memref<1x8x16xf32, #tpu.memory_space<vmem>>) attributes {dimension_semantics = [#tpu.dimension_semantics<parallel>, #tpu.dimension_semantics<parallel>], iteration_bounds = array<i64: 2, 1>, scalar_prefetch = 0 : i64, scratch_operands = 0 : i64, tpu.core_type = #tpu.core_type<tc>, window_params = [{transform_indices = @transform_0, window_bounds = array<i64: 1, 1, 4, 20>}, {pipeline_mode = #tpu.pipeline_mode<synchronous>, transform_indices = @transform_1, window_bounds = array<i64: 8, 16>}, {pipeline_mode = #tpu.pipeline_mode<synchronous>, transform_indices = @transform_2, window_bounds = array<i64: 8, 24>}, {pipeline_mode = #tpu.pipeline_mode<synchronous>, transform_indices = @transform_3, window_bounds = array<i64: 8, 3>}, {transform_indices = @transform_4, window_bounds = array<i64: 1, 8, 16>}]} {
    %c0 = arith.constant 0 : index
    %c0_0 = arith.constant 0 : index
    %c0_1 = arith.constant 0 : index
    %c0_2 = arith.constant 0 : index
    %0 = vector.load %arg2[%c0, %c0_0, %c0_1, %c0_2] : memref<1x1x4x20xf32, #tpu.memory_space<vmem>>, vector<1x1x4x20xf32>
    %1 = vector.shape_cast %0 : vector<1x1x4x20xf32> to vector<4x20xf32>
    %c0_3 = arith.constant 0 : index
    %c0_4 = arith.constant 0 : index
    %2 = vector.load %arg5[%c0_3, %c0_4] : memref<8x3xf32, #tpu.memory_space<vmem>>, vector<8x1xf32>
    %c0_5 = arith.constant 0 : index
    %c1 = arith.constant 1 : index
    %3 = vector.load %arg5[%c0_5, %c1] : memref<8x3xf32, #tpu.memory_space<vmem>>, vector<8x1xf32>
    %c0_6 = arith.constant 0 : index
    %c0_7 = arith.constant 0 : index
    %4 = vector.load %arg3[%c0_6, %c0_7] : memref<8x16xf32, #tpu.memory_space<vmem>>, vector<8x4xf32>
    %5 = vector.extract_strided_slice %1 {offsets = [0, 0], sizes = [4, 18], strides = [1, 1]} : vector<4x20xf32> to vector<4x18xf32>
    %cst = arith.constant dense<0.000000e+00> : vector<8x18xf32>
    %6 = tpu.matmul %4, %5, %cst {dimension_numbers = #tpu.dot_dimension_numbers<[1], [0], [0], [1], [0, 0, 1, 1], [], []>} : vector<8x4xf32>, vector<4x18xf32>, vector<8x18xf32> -> vector<8x18xf32>
    %c0_8 = arith.constant 0 : index
    %c4 = arith.constant 4 : index
    %7 = vector.load %arg3[%c0_8, %c4] : memref<8x16xf32, #tpu.memory_space<vmem>>, vector<8x4xf32>
    %8 = vector.extract_strided_slice %1 {offsets = [0, 1], sizes = [4, 18], strides = [1, 1]} : vector<4x20xf32> to vector<4x18xf32>
    %cst_9 = arith.constant dense<0.000000e+00> : vector<8x18xf32>
    %9 = tpu.matmul %7, %8, %cst_9 {dimension_numbers = #tpu.dot_dimension_numbers<[1], [0], [0], [1], [0, 0, 1, 1], [], []>} : vector<8x4xf32>, vector<4x18xf32>, vector<8x18xf32> -> vector<8x18xf32>
    %10 = arith.addf %6, %9 : vector<8x18xf32>
    %c0_10 = arith.constant 0 : index
    %c8 = arith.constant 8 : index
    %11 = vector.load %arg3[%c0_10, %c8] : memref<8x16xf32, #tpu.memory_space<vmem>>, vector<8x4xf32>
    %12 = vector.extract_strided_slice %1 {offsets = [0, 2], sizes = [4, 18], strides = [1, 1]} : vector<4x20xf32> to vector<4x18xf32>
    %cst_11 = arith.constant dense<0.000000e+00> : vector<8x18xf32>
    %13 = tpu.matmul %11, %12, %cst_11 {dimension_numbers = #tpu.dot_dimension_numbers<[1], [0], [0], [1], [0, 0, 1, 1], [], []>} : vector<8x4xf32>, vector<4x18xf32>, vector<8x18xf32> -> vector<8x18xf32>
    %14 = arith.addf %10, %13 : vector<8x18xf32>
    %15 = vector.broadcast %2 : vector<8x1xf32> to vector<8x18xf32>
    %16 = arith.addf %14, %15 : vector<8x18xf32>
    %cst_12 = arith.constant 0.000000e+00 : f32
    %17 = vector.broadcast %cst_12 : f32 to vector<8x18xf32>
    %18 = arith.maximumf %16, %17 : vector<8x18xf32>
    %19 = tpu.iota {dimensions = array<i32: 1>} : vector<1x18xi32>
    %c16_i32 = arith.constant 16 : i32
    %20 = arith.muli %arg1, %c16_i32 : i32
    %21 = vector.broadcast %20 : i32 to vector<1x18xi32>
    %22 = arith.addi %21, %19 : vector<1x18xi32>
    %c1_i32 = arith.constant 1 : i32
    %23 = vector.broadcast %c1_i32 : i32 to vector<1x18xi32>
    %24 = arith.cmpi sge, %22, %23 : vector<1x18xi32>
    %c17_i32 = arith.constant 17 : i32
    %25 = vector.broadcast %c17_i32 : i32 to vector<1x18xi32>
    %26 = arith.cmpi slt, %22, %25 : vector<1x18xi32>
    %27 = arith.andi %24, %26 : vector<1x18xi1>
    %cst_13 = arith.constant 0.000000e+00 : f32
    %28 = vector.shape_cast %27 : vector<1x18xi1> to vector<1x18xi1>
    %29 = vector.broadcast %28 : vector<1x18xi1> to vector<8x18xi1>
    %30 = vector.broadcast %cst_13 : f32 to vector<8x18xf32>
    %31 = arith.select %29, %18, %30 : vector<8x18xi1>, vector<8x18xf32>
    %c0_14 = arith.constant 0 : index
    %c0_15 = arith.constant 0 : index
    %32 = vector.load %arg4[%c0_14, %c0_15] : memref<8x24xf32, #tpu.memory_space<vmem>>, vector<8x8xf32>
    %33 = vector.extract_strided_slice %31 {offsets = [0, 0], sizes = [8, 16], strides = [1, 1]} : vector<8x18xf32> to vector<8x16xf32>
    %cst_16 = arith.constant dense<0.000000e+00> : vector<8x16xf32>
    %34 = tpu.matmul %32, %33, %cst_16 {dimension_numbers = #tpu.dot_dimension_numbers<[1], [0], [0], [1], [0, 0, 1, 1], [], []>} : vector<8x8xf32>, vector<8x16xf32>, vector<8x16xf32> -> vector<8x16xf32>
    %c0_17 = arith.constant 0 : index
    %c8_18 = arith.constant 8 : index
    %35 = vector.load %arg4[%c0_17, %c8_18] : memref<8x24xf32, #tpu.memory_space<vmem>>, vector<8x8xf32>
    %36 = vector.extract_strided_slice %31 {offsets = [0, 1], sizes = [8, 16], strides = [1, 1]} : vector<8x18xf32> to vector<8x16xf32>
    %cst_19 = arith.constant dense<0.000000e+00> : vector<8x16xf32>
    %37 = tpu.matmul %35, %36, %cst_19 {dimension_numbers = #tpu.dot_dimension_numbers<[1], [0], [0], [1], [0, 0, 1, 1], [], []>} : vector<8x8xf32>, vector<8x16xf32>, vector<8x16xf32> -> vector<8x16xf32>
    %38 = arith.addf %34, %37 : vector<8x16xf32>
    %c0_20 = arith.constant 0 : index
    %c16 = arith.constant 16 : index
    %39 = vector.load %arg4[%c0_20, %c16] : memref<8x24xf32, #tpu.memory_space<vmem>>, vector<8x8xf32>
    %40 = vector.extract_strided_slice %31 {offsets = [0, 2], sizes = [8, 16], strides = [1, 1]} : vector<8x18xf32> to vector<8x16xf32>
    %cst_21 = arith.constant dense<0.000000e+00> : vector<8x16xf32>
    %41 = tpu.matmul %39, %40, %cst_21 {dimension_numbers = #tpu.dot_dimension_numbers<[1], [0], [0], [1], [0, 0, 1, 1], [], []>} : vector<8x8xf32>, vector<8x16xf32>, vector<8x16xf32> -> vector<8x16xf32>
    %42 = arith.addf %38, %41 : vector<8x16xf32>
    %43 = vector.broadcast %3 : vector<8x1xf32> to vector<8x16xf32>
    %44 = arith.addf %42, %43 : vector<8x16xf32>
    %c0_22 = arith.constant 0 : index
    %c2 = arith.constant 2 : index
    %45 = vector.load %arg5[%c0_22, %c2] : memref<8x3xf32, #tpu.memory_space<vmem>>, vector<8x1xf32>
    %c0_23 = arith.constant 0 : index
    %c12 = arith.constant 12 : index
    %46 = vector.load %arg3[%c0_23, %c12] : memref<8x16xf32, #tpu.memory_space<vmem>>, vector<8x4xf32>
    %47 = vector.extract_strided_slice %1 {offsets = [0, 2], sizes = [4, 16], strides = [1, 1]} : vector<4x20xf32> to vector<4x16xf32>
    %cst_24 = arith.constant dense<0.000000e+00> : vector<8x16xf32>
    %48 = tpu.matmul %46, %47, %cst_24 {dimension_numbers = #tpu.dot_dimension_numbers<[1], [0], [0], [1], [0, 0, 1, 1], [], []>} : vector<8x4xf32>, vector<4x16xf32>, vector<8x16xf32> -> vector<8x16xf32>
    %49 = vector.broadcast %45 : vector<8x1xf32> to vector<8x16xf32>
    %50 = arith.addf %48, %49 : vector<8x16xf32>
    %51 = arith.addf %44, %50 : vector<8x16xf32>
    %cst_25 = arith.constant 0.000000e+00 : f32
    %52 = vector.broadcast %cst_25 : f32 to vector<8x16xf32>
    %53 = arith.maximumf %51, %52 : vector<8x16xf32>
    %c0_26 = arith.constant 0 : index
    %c0_27 = arith.constant 0 : index
    %c0_28 = arith.constant 0 : index
    %54 = vector.load %arg6[%c0_26, %c0_27, %c0_28] : memref<1x8x16xf32, #tpu.memory_space<vmem>>, vector<1x8x16xf32>
    %55 = vector.shape_cast %54 : vector<1x8x16xf32> to vector<8x16xf32>
    %56 = vector.shape_cast %53 : vector<8x16xf32> to vector<1x8x16xf32>
    tpu.vector_store %arg6[%c0_26, %c0_27, %c0_28], %56 {strides = array<i32>} : memref<1x8x16xf32, #tpu.memory_space<vmem>>, vector<1x8x16xf32>,
    return
  }
  func.func @transform_0(%arg0: i32, %arg1: i32) -> (i32, i32, i32, i32) {
    %c0_i32 = arith.constant 0 : i32
    %c0_i32_0 = arith.constant 0 : i32
    %c0_i32_1 = arith.constant 0 : i32
    return %arg0, %arg1, %c0_i32, %c0_i32_0 : i32, i32, i32, i32
  }
  func.func @transform_1(%arg0: i32, %arg1: i32) -> (i32, i32) {
    %c0_i32 = arith.constant 0 : i32
    %c0_i32_0 = arith.constant 0 : i32
    %c0_i32_1 = arith.constant 0 : i32
    return %c0_i32, %c0_i32_0 : i32, i32
  }
  func.func @transform_2(%arg0: i32, %arg1: i32) -> (i32, i32) {
    %c0_i32 = arith.constant 0 : i32
    %c0_i32_0 = arith.constant 0 : i32
    %c0_i32_1 = arith.constant 0 : i32
    return %c0_i32, %c0_i32_0 : i32, i32
  }
  func.func @transform_3(%arg0: i32, %arg1: i32) -> (i32, i32) {
    %c0_i32 = arith.constant 0 : i32
    %c0_i32_0 = arith.constant 0 : i32
    %c0_i32_1 = arith.constant 0 : i32
    return %c0_i32, %c0_i32_0 : i32, i32
  }
  func.func @transform_4(%arg0: i32, %arg1: i32) -> (i32, i32, i32) {
    %c0_i32 = arith.constant 0 : i32
    %c0_i32_0 = arith.constant 0 : i32
    return %arg0, %c0_i32, %arg1 : i32, i32, i32
  }
}

</mosaic_0001>

<bundles_post_ra>
// kernel: tpu_custom_call.1
= control target key start
LH: loop header
LB: loop body
LE: loop exit
PB: predicated region body
PF: predicated region fallthrough
CT: control target
= control target key end

     0   :  { %9 = vsyncpa [#allocation3], 0  ;;  %s1021_s0 = inlined_call_operand.vmem [shape: f32[2,1,4,20], index: 0, kind: input, shape index: {}]   ;;  %s1022_s1 = inlined_call_operand.hbm [shape: f32[8,16], index: 1, kind: input, shape index: {}]   ;;  %s1023_s2 = inlined_call_operand.hbm [shape: f32[8,24], index: 2, kind: input, shape index: {}]   ;;  %s1024_s3 = inlined_call_operand.vmem [shape: f32[8,3], index: 3, kind: input, shape index: {}]   ;;  %s1025_s4 = inlined_call_operand.hbm [shape: f32[2,8,16], index: 4, kind: output, shape index: {}]  }
   0x1   :  { %10 = vsyncpa [#allocation6], 0 }
   0x2   :  { %11 = vsyncpa [#allocation4], 0 }
   0x3   :  { %13 = vsyncpa [#allocation4 + $0x1], 0  ;;  %s882_s15 = smov 0   ;;  %s884_s16 = smov 0  }
   0x4   :  { %s886_s17 = smov 0   ;;  %s888_s18 = smov 0  }
   0x5   :  { %s890_s19 = smov 0   ;;  %s892_s20 = smov 0  }
   0x6 LB: > { %s582_s21 = sadd.s32 4294967295, %s844_s20   ;;  %s583_s22 = sadd.s32 4294967294, %s844_s20   ;;  %s844_s20 = sphi %s892_s20, %s19_s20   ;;  %s840_s19 = sphi %s890_s19, %s1034_s19   ;;  %s836_s18 = sphi %s888_s18, %s1033_s18   ;;  %s832_s17 = sphi %s886_s17, %s1032_s17   ;;  %s828_s16 = sphi %s884_s16, %s1031_s16   ;;  %s824_s15 = sphi %s882_s15, %s1030_s15  }
   0x7   : > { %s31_s23 = sadd.s32 1, %s840_s19  ;;  %s131_s24 = sadd.s32 1, %s832_s17 }
   0x8   : > { %p33_p0 = scmp.ge.s32.totalorder %s31_s23, 2  ;;  %p141_p1 = scmp.ne.s32.totalorder %s832_s17, %s828_s16 }
   0x9   : > { %p142_p2 = scmp.eq.s32.totalorder %s582_s21, 1  ;;  %p147_p3 = scmp.ne.s32.totalorder %s828_s16, %s824_s15 }
   0xa   : > { %s1036_s23 = smov (%p33_p0, %s31_s23), 0  ;;  %p148_p5 = scmp.eq.s32.totalorder %s583_s22, 1 }
   0xb   : > { %p922_p4 = por %p142_p2, %p141_p1  ;;  %s126_s26 = ssub.s32 %s840_s19, %s1036_s23 }
   0xc   : > { %p584_p6 = scmp.ge.s32.totalorder %s844_s20, 1  ;;  %p129_p7 = scmp.eq.s32.totalorder %s126_s26, 0 }
   0xd   : > { %p929_p8 = por %p148_p5, %p147_p3  ;;  %p155_p9 = scmp.lt.s32.totalorder %s844_s20, 3 }
   0xe   : > { %s935_s28 = scalar_select %p129_p7, %s832_s17, %s131_s24  }
   0xf   : > { %p937_p10 = pnand %p584_p6, %p155_p9  ;;  %p941_p11 = scmp.eq.s32.totalorder %s582_s21, 0 }
  0x10   : > { %s167_s7 = sshll.u32 %s1022_s1, 4  ;;  %s846_s8 = smov [#allocation2]   ;;  %s168_s7 = int_to_ptr.hbm [resolvable:$true] %s167_s7 }
  0x11   : > { %p619_p12 = pneg %p937_p10  ;;  %s169_s9 = sshll.u32 %s846_s8, 4  ;;  %s170_s9 = int_to_ptr.vmem [resolvable:$true] %s169_s9 }
  0x12   : > { %s179_s12 = sshll.u32 %s1023_s2, 4  ;;  %s847_s13 = smov [#allocation5]   ;;  %s180_s12 = int_to_ptr.hbm [resolvable:$true] %s179_s12 }
  0x13   : > { %p620_p13 = pnand %p941_p11, %p619_p12  ;;  %s181_s14 = sshll.u32 %s847_s13, 4  ;;  %s182_s14 = int_to_ptr.vmem [resolvable:$true] %s181_s14 }
  0x14   : > { %207 = sbr.rel (%p937_p10) target bundleno = 534 (0x216), region = 36 }
  0x15   : > { %622 = dma.hbm_to_vmem [thread:$0]  (!%p620_p13), %s168_s7, 128, %s170_s9, [#allocation3]  }
  0x16   : > { %625 = dma.hbm_to_vmem [thread:$0]  (!%p620_p13), %s180_s12, 128, %s182_s14, [#allocation6]  }
  0x19   : > { %811 = dma.done.wait (%p941_p11), [#allocation3], 128  }
  0x1a   : > { %813 = vsyncadd (%p941_p11), [#allocation3], 4294967168 }
  0x1b   : > { %815 = dma.done.wait (%p941_p11), [#allocation6], 128  }
  0x1c   : > { %817 = vsyncadd (%p941_p11), [#allocation6], 4294967168  ;;  %p241_p0 = scmp.lt.s32.totalorder %s836_s18, 1  ;;  %s848_s5 = smov 126   ;;  %v250_v1 = vld [vmem:[#allocation2] sm:$0xff]  ;;  %vm260_vm0 = vcmask 1043456   ;;  %v343_v9 = vlaneseq }
  0x1d   : > { %s849_s6 = smov 127   ;;  %s850_s7 = smov 120   ;;  %vm257_vm1 = vcmask 31744   ;;  %v249_v2 = vld [vmem:[%s1024_s3] sm:$0xff]  ;;  %v354_v3 = vld [vmem:[#allocation5] sm:$0xff]  ;;  %v853_v4 = vmov 0  }
  0x1e   : > { %s242_s21 = scalar_select %p241_p0, %s836_s18, 1  ;;  %694 = vset.pattern.permute.xlu2 %v853_v4  ;;  %v344_v13 = vand.u32 127, %v343_v9  ;;  %vm362_vm5 = vcmask 64512   ;;  %v855_v21 = vmov 1   ;;  %v856_v22 = vmov 2  }
  0x1f   : > { %s851_s30 = smov 124   ;;  %s852_s8 = smov 116   ;;  %338 = vperm.xlu2 %694, %v249_v2   ;;  %695 = vset.pattern.permute.xlu1 %v855_v21  ;;  %vm470_vm6 = vcmask 130048  }
  0x20   : > { %s592_s22 = sshll.u32 %s242_s21, 2  ;;  %s854_s11 = smov 112   ;;  %vm348_vm2 = vcmp.ge.s32.totalorder %v344_v13, 1  ;;  %vm349_vm3 = vcmp.lt.s32.totalorder %v344_v13, 17  ;;  %697 = vset.pattern.permute.xlu0 %v856_v22 }
  0x21   : > { %s247_s29 = scalar_lea.vmem %s1021_s0, %s592_s22  ;;  %vm350_vm4 = vmand %vm348_vm2, %vm349_vm3  ;;  %s238_s12 = sand.u32 1, %s828_s16  }
  0x22   : > { %v248_v0 = vld [vmem:[%s247_s29] sm:$0xf]  ;;  %s591_s13 = sshll.u32 %s238_s12, 3  ;;  %s606_s14 = sshll.u32 %s836_s18, 3 }
  0x23   : > { %309 = vrot.lane.b32.xlu0 %v248_v0, %s848_s5  ;;  %255 = vrot.lane.b32.xlu1 %v248_v0, %s849_s6  ;;  %s484_s24 = scalar_lea.hbm %s1025_s4, %s606_s14  ;;  %s240_s26 = scalar_lea.vmem [#allocation7], %s591_s13 }
  0x24   : > { %595 = vmatpush.msk.msra.mxu1 %vm260_vm0, %v248_v0  ;;  %s486_s29 = sshll.u32 %s240_s26, 4  ;;  %s473_s18 = scalar_lea.sflag [#allocation4], %s238_s12  ;;  %s487_s29 = int_to_ptr.vmem [resolvable:$true] %s486_s29 }
  0x25   : > { %596 = vmatmul.msk.f32.vlgmr.msra.gmra.mxu1 %vm257_vm1, %v250_v1  ;;  %s778_s9 = scalar_lea.hbm %s1025_s4, 16 }
  0x27   : > { %696 = vset.pattern.permute.xlu2 %v856_v22 }
  0x2b   : > { %307 = vrot.lane.b32.xlu0 %v250_v1, %s850_s7  ;;  %252 = vrot.lane.b32.xlu1 %v250_v1, %s851_s30 }
  0x33   : > { %444 = vrot.lane.b32.xlu1 %v250_v1, %s852_s8  ;;  %356 = vrot.lane.b32.xlu0 %v354_v3, %s850_s7 }
  0x3b   : > { %407 = vrot.lane.b32.xlu0 %v354_v3, %s854_s11  ;;  %436 = vperm.xlu1 %695, %v249_v2  }
  0x79   : > { %v339_v15 = vpop.permute.xlu2 %338 }
  0x95   : > { %v310_v5 = vpop.permute.xlu0 %309  ;;  %v256_v6 = vpop.permute.xlu1 %255 }
  0x96   : > { %597 = vmatpush.msk.msra.mxu2 %vm260_vm0, %v310_v5  ;;  %593 = vmatpush.msk.msra.mxu0 %vm260_vm0, %v256_v6 }
  0x98   : > { %603 = vmatpush.msk.msrb.mxu2 %vm260_vm0, %v310_v5 }
  0x9d   : > { %v308_v7 = vpop.permute.xlu0 %307  ;;  %v253_v8 = vpop.permute.xlu1 %252 }
  0x9e   : > { %598 = vmatmul.msk.f32.vlgmr.msra.gmra.mxu2 %vm257_vm1, %v308_v7  ;;  %594 = vmatmul.msk.f32.vlgmr.msra.gmra.mxu0 %vm257_vm1, %v253_v8 }
  0xa2   : > { %v304_v11 = vpop.f32.mrf.mxu1 }
  0xa5   : > { %v445_v20 = vpop.permute.xlu1 %444  ;;  %v357_v23 = vpop.permute.xlu0 %356 }
  0xa6   : > { %604 = vmatmul.msk.f32.vlgmr.msrb.gmra.mxu2 %vm257_vm1, %v445_v20 }
  0xad   : > { %v408_v25 = vpop.permute.xlu0 %407  ;;  %v437_v33 = vpop.permute.xlu1 %436 }
 0x11b   : > { %v280_v10 = vpop.f32.mrf.mxu0 }
 0x11c   : > { %v305_v12 = vadd.f32 %v304_v11, %v280_v10 }
 0x121   : > { %v332_v14 = vpop.f32.mrf.mxu2 }
 0x122   : > { %v335_v16 = vadd.f32 %v332_v14, %v305_v12 }
 0x124   : > { %v341_v17 = vadd.f32 %v339_v15, %v335_v16 }
 0x126   : > { %v342_v18 = vmax.f32 %v341_v17, 0.0 }
 0x128   : > { %600 = vmatpush.msk.msrb.mxu0 %vm350_vm4, %v342_v18  ;;  %v353_v19 = vsel %vm350_vm4, %v342_v18, 0.0 }
 0x129   : > { %359 = vrot.lane.b32.xlu2 %v353_v19, %s849_s6  ;;  %601 = vmatmul.msk.f32.vlgmr.msrb.gmra.mxu0 %vm362_vm5, %v354_v3  ;;  %v465_v28 = vpop.f32.mrf.mxu2 }
 0x131   : > { %409 = vrot.lane.b32.xlu2 %v353_v19, %s848_s5  ;;  %s488_s5 = sshll.u32 %s484_s24, 4  ;;  %s489_s5 = int_to_ptr.hbm [resolvable:$true] %s488_s5 }
 0x132   : > { %s772_s6 = sshra.s32 %s489_s5, 4  ;;  %s773_s6 = int_to_ptr.hbm [resolvable:$true] %s772_s6 }
 0x133   : > { %s774_s7 = scalar_lea.hbm %s773_s6, 8  ;;  %p779_p5 = scmp.lt.s32.totalorder %s773_s6, %s1025_s4 }
 0x134   : > { %p775_p1 = scmp.ne.s32.totalorder %s773_s6, %s774_s7  ;;  %p780_p6 = scmp.lt.s32.totalorder %s778_s9, %s774_s7 }
 0x136   : > { %p776_p2 = pnand %p775_p1, %p922_p4  ;;  %p781_p7 = por %p780_p6, %p779_p5 }
 0x138   : > { %p777_p3 = pneg %p776_p2 }
 0x139   : > { %441 = vperm.xlu2 %696, %v249_v2  }
 0x13a   : > { %p782_p9 = pnand %p781_p7, %p777_p3 }
 0x183   : > { %v360_v24 = vpop.permute.xlu2 %359 }
 0x184   : > { %380 = vmatpush.msra.mxu3 %v360_v24 }
 0x185   : > { %599 = vmatmul.msk.f32.vlgmr.msra.gmra.mxu3 %vm362_vm5, %v357_v23 }
 0x18b   : > { %v410_v26 = vpop.permute.xlu2 %409 }
 0x18c   : > { %429 = vmatpush.msrb.mxu1 %v410_v26 }
 0x18d   : > { %602 = vmatmul.msk.f32.vlgmr.msrb.gmra.mxu1 %vm362_vm5, %v408_v25 }
 0x193   : > { %v442_v30 = vpop.permute.xlu2 %441 }
 0x194   : > { %v466_v35 = vadd.f32 %v465_v28, %v442_v30 }
 0x1a6   : > { %v404_v27 = vpop.f32.mrf.mxu0 }
 0x208   : > { %v382_v29 = vpop.f32.mrf.mxu3 }
 0x209   : > { %v405_v31 = vadd.f32 %v404_v27, %v382_v29 }
 0x20a   : > { %v431_v32 = vpop.f32.mrf.mxu1 }
 0x20b   : > { %v434_v34 = vadd.f32 %v431_v32, %v405_v31 }
 0x20d   : > { %v439_v36 = vadd.f32 %v437_v33, %v434_v34 }
 0x20f   : > { %v468_v37 = vadd.f32 %v466_v35, %v439_v36 }
 0x211   : > { %v469_v38 = vmax.f32 %v468_v37, 0.0 }
 0x213   : > { %471 = vst.msk [vmem:[%s240_s26] sm:$0xff] %vm470_vm6, %v469_v38 }
 0x214   : > { %785 = shalt.err (!%p782_p9)
}
 0x215   : > { %617 = dma.vmem_to_hbm [thread:$0]  (%p922_p4), %s487_s29, 128, %s489_s5, %s473_s18  }
 0x216 PF: > { %p634_p10 = scmp.ge.s32.totalorder %s844_s20, 2  ;;  %s500_s12 = sand.u32 1, %s824_s15  }
 0x217   : > { %s501_s13 = scalar_lea.sflag [#allocation4], %s500_s12 }
 0x218   : > { %p627_p11 = pnand %p634_p10, %p929_p8 }
 0x21a   : > { %p628_p12 = pneg %p627_p11 }
 0x21c   : > { %819 = dma.done.wait (%p628_p12), %s501_s13, 128  }
 0x21d   : > { %821 = vsyncadd (%p628_p12), %s501_s13, 4294967168  ;;  %s19_s20 = sadd.s32 1, %s844_s20   ;;  %s1030_s15 = smov %s828_s16 }
 0x21e   : > { %p16_p13 = scmp.ge.s32.totalorder %s19_s20, 4   ;;  %s1031_s16 = smov %s832_s17 }
 0x21f   : > { %s1032_s17 = smov %s935_s28  ;;  %s1033_s18 = smov %s840_s19 }
 0x220   : > { %s1034_s19 = smov %s1036_s23  ;;  %18 = sbr.rel (!%p16_p13) target bundleno = 6 (0x6), region = 80 }
 0x225   :  { %507 = vsyncpa [#allocation3], 1 }
 0x226   :  { %509 = vsyncpa [#allocation3 + $0x1], 1 }
 0x227   :  { %510 = vsyncpa [#allocation6], 1 }
 0x228   :  { %511 = vsyncpa [#allocation4], 1 }
 0x229   :  { %513 = vsyncpa [#allocation4 + $0x1], 1 }

</bundles_post_ra>
